<compile_context>
chip_gen: v7x
topology: tpu7x:2x2x1
jax: 0.10.0
libtpu: 0.0.40
codegen_flags: <defaults>
</compile_context>

<pallas_src>
import functools

import jax
import jax.numpy as jnp
from jax.experimental import pallas as pl
from jax.experimental.pallas import tpu as pltpu

LOG_STD_MIN = -20.0
LOG_STD_MAX = 2.0


def _round_up(x, m):
    return (x + m - 1) // m * m


def _vmem_limit_bytes():
    """Generation-aware scoped-VMEM limit.

    v7x has only 64 MiB physical VMEM -> cap at 48 MiB to leave room for the
    double-buffered state/out tiles; v5e/v6e (128 MiB) can use much more.
    Falls back to the conservative 32 MiB if the query is unavailable.
    """
    try:
        cap = int(pltpu.get_tpu_info().vmem_capacity_bytes)
    except Exception:  # pragma: no cover - hardware-query not available
        return 32 * 1024 * 1024
    if cap <= 64 * 1024 * 1024:
        return 48 * 1024 * 1024
    return 96 * 1024 * 1024


def _resident_spec(block_shape):
    """BlockSpec for weights/biases: constant (0,0) index_map (VMEM-resident
    across all grid steps) with a single pipeline buffer (no double-buffering
    of data that never changes)."""
    idx = lambda i: (0, 0)
    try:
        return pl.BlockSpec(block_shape, idx, pipeline_mode=pl.Buffered(1))
    except (TypeError, AttributeError):
        # Older jax without pipeline_mode: default double-buffering.
        return pl.BlockSpec(block_shape, idx)


def gaussian_policy_kernel(
    state_ref,            # [TB, Sp]  f32
    w1_ref, b1_ref,       # [Sp, Hp] (bf16|f32), [1, Hp] f32
    w2_ref, b2_ref,       # [Hp, Hp] (bf16|f32), [1, Hp] f32
    wh_ref, bh_ref,       # [Hp, Np] (bf16|f32), [1, Np] f32   fused (mean|log_std)
    out_ref,              # [TB, Np] f32; cols [0,A)=mean, [A,2A)=log_std, rest pad
    *, action_dim, precision,
):
    w_dtype = w1_ref.dtype  # bf16 fast path or f32 exact path (trace-time)

    # Hoist bias loads once per body (f32 bias add regardless of weight dtype).
    b1 = b1_ref[...]
    b2 = b2_ref[...]
    bh = bh_ref[...]

    # linear1 + relu: MXU matmul in the weight dtype, f32 accumulation.
    x = state_ref[...].astype(w_dtype)
    h1 = jnp.dot(x, w1_ref[...], precision=precision,
                 preferred_element_type=jnp.float32) + b1
    h1 = jnp.maximum(h1, 0.0)

    # linear2 + relu
    h2 = jnp.dot(h1.astype(w_dtype), w2_ref[...], precision=precision,
                 preferred_element_type=jnp.float32) + b2
    h2 = jnp.maximum(h2, 0.0)

    # fused heads: one matmul, one lane-dense store
    head = jnp.dot(h2.astype(w_dtype), wh_ref[...], precision=precision,
                   preferred_element_type=jnp.float32) + bh

    # Clamp only the log_std columns (col >= action_dim); mean columns pass
    # through untouched.  These ~5 VPU ops ride in VALU slots idle under the
    # MXU, so they are effectively free (kept in-kernel on purpose).
    col = jax.lax.broadcasted_iota(jnp.int32, head.shape, 1)
    clamped = jnp.clip(head, LOG_STD_MIN, LOG_STD_MAX)
    out_ref[...] = jnp.where(col < action_dim, head, clamped).astype(out_ref.dtype)


def gaussian_policy_forward(state, params, *, block_b=1024, use_bf16=True):
    """GaussianPolicy forward in a single Pallas kernel.

    state:  [B, state_dim] float32
    params: dict with w1,b1,w2,b2,wm,bm,ws,bs (weights [in,out], biases [1,out]).
    use_bf16: bf16 MXU operands with f32 accumulation (fast, default) vs.
              exact f32 with Precision.HIGHEST.
    Returns (mean, log_std), each [B, action_dim] float32.
    """
    B, S = state.shape
    H = params["w1"].shape[1]
    A = params["wm"].shape[1]

    # Lane-pad hidden dim and fused head width to multiples of 128.  State
    # lanes stay unpadded when S is small (padding would multiply HBM reads);
    # only lane-pad a large, misaligned S.
    Hp = _round_up(H, 128)
    Np = _round_up(2 * A, 128)
    Sp = S if S < 128 else _round_up(S, 128)

    w_dtype = jnp.bfloat16 if use_bf16 else jnp.float32
    precision = (jax.lax.Precision.DEFAULT if use_bf16
                 else jax.lax.Precision.HIGHEST)

    def pad2(a, rows, cols, dtype=jnp.float32):
        a = jnp.pad(a, ((0, rows - a.shape[0]), (0, cols - a.shape[1])))
        return a.astype(dtype)

    w1 = pad2(params["w1"], Sp, Hp, w_dtype)
    b1 = pad2(params["b1"], 1, Hp)
    w2 = pad2(params["w2"], Hp, Hp, w_dtype)
    b2 = pad2(params["b2"], 1, Hp)
    wh = pad2(jnp.concatenate([params["wm"], params["ws"]], axis=1), Hp, Np, w_dtype)
    bh = pad2(jnp.concatenate([params["bm"], params["bs"]], axis=1), 1, Np)

    # Batch tiling policy:
    #  * B <= block_b: split into (at least) 2 tiles so v7x's two TensorCores
    #    both get work via the "parallel" grid axis.
    #  * B >  block_b: block_b-row tiles (grid automatically >= 2 steps).
    # Padded batch rows compute garbage and are sliced off below.
    if B <= block_b:
        TB = max(8, _round_up(-(-B // 2), 8))
        Bp = max(_round_up(B, TB), 2 * TB)
    else:
        TB = block_b
        Bp = _round_up(B, TB)
    state_p = jnp.pad(state, ((0, Bp - B), (0, Sp - S)))

    grid = (Bp // TB,)

    wbytes = 2 if use_bf16 else 4
    cost = pl.CostEstimate(
        flops=2 * Bp * (Sp * Hp + Hp * Hp + Hp * Np),
        transcendentals=0,
        bytes_accessed=(4 * (Bp * Sp + Hp + Hp + Np + Bp * Np)
                        + wbytes * (Sp * Hp + Hp * Hp + Hp * Np)),
    )

    out = pl.pallas_call(
        functools.partial(gaussian_policy_kernel, action_dim=A,
                          precision=precision),
        out_shape=jax.ShapeDtypeStruct((Bp, Np), jnp.float32),
        grid=grid,
        in_specs=[
            # TODO(synk): if bf16 makes this DMA-exposed at very large B, add
            # pipeline_mode=pl.Buffered(3) to this streaming state spec.
            pl.BlockSpec((TB, Sp), lambda i: (i, 0)),   # state: tiled over batch
            _resident_spec((Sp, Hp)),                   # weights/biases: resident
            _resident_spec((1, Hp)),
            _resident_spec((Hp, Hp)),
            _resident_spec((1, Hp)),
            _resident_spec((Hp, Np)),
            _resident_spec((1, Np)),
        ],
        out_specs=pl.BlockSpec((TB, Np), lambda i: (i, 0)),
        compiler_params=pltpu.CompilerParams(
            dimension_semantics=("parallel",),
            vmem_limit_bytes=_vmem_limit_bytes(),
        ),
        cost_estimate=cost,
    )(state_p, w1, b1, w2, b2, wh, bh)

    mean = out[:B, :A]
    log_std = out[:B, A:2 * A]
    return mean, log_std


def init_params(key, state_dim, action_dim, hidden_dim):
    """Deterministic synthetic parameters (PyTorch Linear-like uniform init).

    Note: for best MXU-width utilization on v6e/v7x (256x256 MXU), prefer
    hidden_dim that is a real multiple of 256; 128 multiples are the floor
    for v5e.  (Zero-padding does not buy this back.)
    """
    keys = jax.random.split(key, 8)

    def linear(kw, kb, fan_in, fan_out):
        bound = 1.0 / jnp.sqrt(fan_in)
        w = jax.random.uniform(kw, (fan_in, fan_out), jnp.float32, -bound, bound)
        b = jax.random.uniform(kb, (1, fan_out), jnp.float32, -bound, bound)
        return w, b

    w1, b1 = linear(keys[0], keys[1], state_dim, hidden_dim)
    w2, b2 = linear(keys[2], keys[3], hidden_dim, hidden_dim)
    wm, bm = linear(keys[4], keys[5], hidden_dim, action_dim)
    ws, bs = linear(keys[6], keys[7], hidden_dim, action_dim)
    return dict(w1=w1, b1=b1, w2=w2, b2=b2, wm=wm, bm=bm, ws=ws, bs=bs)


def reference_forward(state, p):
    """Pure-JAX reference (full f32 precision) for correctness checking."""
    hi = jax.lax.Precision.HIGHEST
    x = jnp.maximum(jnp.dot(state, p["w1"], precision=hi) + p["b1"], 0.0)
    x = jnp.maximum(jnp.dot(x, p["w2"], precision=hi) + p["b2"], 0.0)
    mean = jnp.dot(x, p["wm"], precision=hi) + p["bm"]
    log_std = jnp.clip(jnp.dot(x, p["ws"], precision=hi) + p["bs"],
                       LOG_STD_MIN, LOG_STD_MAX)
    return mean, log_std


if __name__ == "__main__":
    # TODO(synk): `sample()` (rsample / softplus / log_prob) is stochastic and
    # outside the deterministic forward pass; only forward() is implemented.
    key = jax.random.PRNGKey(0)
    k_state, k_params = jax.random.split(key)

    B, STATE_DIM, ACTION_DIM, HIDDEN_DIM = 8, 16, 8, 32

    state = jax.random.normal(k_state, (B, STATE_DIM), jnp.float32)
    params = init_params(k_params, STATE_DIM, ACTION_DIM, HIDDEN_DIM)

    ref_mean, ref_log_std = reference_forward(state, params)

    # Exact f32 path (Precision.HIGHEST on the MXU): tight tolerance.
    mean32, log_std32 = gaussian_policy_forward(state, params, use_bf16=False)
    jax.block_until_ready((mean32, log_std32))
    assert mean32.shape == (B, ACTION_DIM) and log_std32.shape == (B, ACTION_DIM)
    assert jnp.allclose(mean32, ref_mean, atol=1e-5, rtol=1e-5)
    assert jnp.allclose(log_std32, ref_log_std, atol=1e-5, rtol=1e-5)

    # Default bf16 fast path (f32 accumulation): bf16-level tolerance.
    mean_bf, log_std_bf = gaussian_policy_forward(state, params)
    jax.block_until_ready((mean_bf, log_std_bf))
    assert mean_bf.shape == (B, ACTION_DIM) and log_std_bf.shape == (B, ACTION_DIM)
    assert jnp.allclose(mean_bf, ref_mean, atol=5e-2, rtol=5e-2)
    assert jnp.allclose(log_std_bf, ref_log_std, atol=5e-2, rtol=5e-2)

    print("KERNEL_OK")
</pallas_src>

<mosaic_0001>
module attributes {stable_mosaic.version = 11 : i64} {
  func.func @gaussian_policy_kernel(%arg0: i32, %arg1: memref<8x16xf32, #tpu.memory_space<vmem>>, %arg2: memref<16x128xf32, #tpu.memory_space<vmem>>, %arg3: memref<1x128xf32, #tpu.memory_space<vmem>>, %arg4: memref<128x128xf32, #tpu.memory_space<vmem>>, %arg5: memref<1x128xf32, #tpu.memory_space<vmem>>, %arg6: memref<128x128xf32, #tpu.memory_space<vmem>>, %arg7: memref<1x128xf32, #tpu.memory_space<vmem>>, %arg8: memref<8x128xf32, #tpu.memory_space<vmem>>) attributes {dimension_semantics = [#tpu.dimension_semantics<parallel>], iteration_bounds = array<i64: 2>, scalar_prefetch = 0 : i64, scratch_operands = 0 : i64, tpu.core_type = #tpu.core_type<tc>, window_params = [{transform_indices = @transform_0, window_bounds = array<i64: 8, 16>}, {pipeline_mode = #tpu.pipeline_mode<synchronous>, transform_indices = @transform_1, window_bounds = array<i64: 16, 128>}, {pipeline_mode = #tpu.pipeline_mode<synchronous>, transform_indices = @transform_2, window_bounds = array<i64: 1, 128>}, {pipeline_mode = #tpu.pipeline_mode<synchronous>, transform_indices = @transform_3, window_bounds = array<i64: 128, 128>}, {pipeline_mode = #tpu.pipeline_mode<synchronous>, transform_indices = @transform_4, window_bounds = array<i64: 1, 128>}, {pipeline_mode = #tpu.pipeline_mode<synchronous>, transform_indices = @transform_5, window_bounds = array<i64: 128, 128>}, {pipeline_mode = #tpu.pipeline_mode<synchronous>, transform_indices = @transform_6, window_bounds = array<i64: 1, 128>}, {transform_indices = @transform_7, window_bounds = array<i64: 8, 128>}]} {
    %c0 = arith.constant 0 : index
    %c0_0 = arith.constant 0 : index
    %0 = vector.load %arg3[%c0, %c0_0] : memref<1x128xf32, #tpu.memory_space<vmem>>, vector<1x128xf32>
    %c0_1 = arith.constant 0 : index
    %c0_2 = arith.constant 0 : index
    %1 = vector.load %arg5[%c0_1, %c0_2] : memref<1x128xf32, #tpu.memory_space<vmem>>, vector<1x128xf32>
    %c0_3 = arith.constant 0 : index
    %c0_4 = arith.constant 0 : index
    %2 = vector.load %arg7[%c0_3, %c0_4] : memref<1x128xf32, #tpu.memory_space<vmem>>, vector<1x128xf32>
    %c0_5 = arith.constant 0 : index
    %c0_6 = arith.constant 0 : index
    %3 = vector.load %arg1[%c0_5, %c0_6] : memref<8x16xf32, #tpu.memory_space<vmem>>, vector<8x16xf32>
    %c0_7 = arith.constant 0 : index
    %c0_8 = arith.constant 0 : index
    %4 = vector.load %arg2[%c0_7, %c0_8] : memref<16x128xf32, #tpu.memory_space<vmem>>, vector<16x128xf32>
    %cst = arith.constant dense<0.000000e+00> : vector<8x128xf32>
    %5 = tpu.matmul %3, %4, %cst {dimension_numbers = #tpu.dot_dimension_numbers<[1], [0], [0], [1], [0, 0, 1, 1], [], []>, precision = #tpu.contract_precision<fp32>} : vector<8x16xf32>, vector<16x128xf32>, vector<8x128xf32> -> vector<8x128xf32>
    %6 = vector.broadcast %0 : vector<1x128xf32> to vector<8x128xf32>
    %7 = arith.addf %5, %6 : vector<8x128xf32>
    %cst_9 = arith.constant 0.000000e+00 : f32
    %8 = vector.broadcast %cst_9 : f32 to vector<8x128xf32>
    %9 = arith.maximumf %7, %8 : vector<8x128xf32>
    %c0_10 = arith.constant 0 : index
    %c0_11 = arith.constant 0 : index
    %10 = vector.load %arg4[%c0_10, %c0_11] : memref<128x128xf32, #tpu.memory_space<vmem>>, vector<128x128xf32>
    %cst_12 = arith.constant dense<0.000000e+00> : vector<8x128xf32>
    %11 = tpu.matmul %9, %10, %cst_12 {dimension_numbers = #tpu.dot_dimension_numbers<[1], [0], [0], [1], [0, 0, 1, 1], [], []>, precision = #tpu.contract_precision<fp32>} : vector<8x128xf32>, vector<128x128xf32>, vector<8x128xf32> -> vector<8x128xf32>
    %12 = vector.broadcast %1 : vector<1x128xf32> to vector<8x128xf32>
    %13 = arith.addf %11, %12 : vector<8x128xf32>
    %cst_13 = arith.constant 0.000000e+00 : f32
    %14 = vector.broadcast %cst_13 : f32 to vector<8x128xf32>
    %15 = arith.maximumf %13, %14 : vector<8x128xf32>
    %c0_14 = arith.constant 0 : index
    %c0_15 = arith.constant 0 : index
    %16 = vector.load %arg6[%c0_14, %c0_15] : memref<128x128xf32, #tpu.memory_space<vmem>>, vector<128x128xf32>
    %cst_16 = arith.constant dense<0.000000e+00> : vector<8x128xf32>
    %17 = tpu.matmul %15, %16, %cst_16 {dimension_numbers = #tpu.dot_dimension_numbers<[1], [0], [0], [1], [0, 0, 1, 1], [], []>, precision = #tpu.contract_precision<fp32>} : vector<8x128xf32>, vector<128x128xf32>, vector<8x128xf32> -> vector<8x128xf32>
    %18 = vector.broadcast %2 : vector<1x128xf32> to vector<8x128xf32>
    %19 = arith.addf %17, %18 : vector<8x128xf32>
    %20 = tpu.iota {dimensions = array<i32: 1>} : vector<8x128xi32>
    %cst_17 = arith.constant -2.000000e+01 : f32
    %cst_18 = arith.constant 2.000000e+00 : f32
    %21 = vector.broadcast %cst_17 : f32 to vector<8x128xf32>
    %22 = arith.maximumf %21, %19 : vector<8x128xf32>
    %23 = vector.broadcast %cst_18 : f32 to vector<8x128xf32>
    %24 = arith.minimumf %23, %22 : vector<8x128xf32>
    %c8_i32 = arith.constant 8 : i32
    %25 = vector.broadcast %c8_i32 : i32 to vector<8x128xi32>
    %26 = arith.cmpi slt, %20, %25 : vector<8x128xi32>
    %27 = arith.select %26, %19, %24 : vector<8x128xi1>, vector<8x128xf32>
    %c0_19 = arith.constant 0 : index
    %c0_20 = arith.constant 0 : index
    %28 = vector.load %arg8[%c0_19, %c0_20] : memref<8x128xf32, #tpu.memory_space<vmem>>, vector<8x128xf32>
    tpu.vector_store %arg8[%c0_19, %c0_20], %27 {strides = array<i32>} : memref<8x128xf32, #tpu.memory_space<vmem>>, vector<8x128xf32>,
    return
  }
  func.func @transform_0(%arg0: i32) -> (i32, i32) {
    %c0_i32 = arith.constant 0 : i32
    %c0_i32_0 = arith.constant 0 : i32
    return %arg0, %c0_i32 : i32, i32
  }
  func.func @transform_1(%arg0: i32) -> (i32, i32) {
    %c0_i32 = arith.constant 0 : i32
    %c0_i32_0 = arith.constant 0 : i32
    %c0_i32_1 = arith.constant 0 : i32
    return %c0_i32, %c0_i32_0 : i32, i32
  }
  func.func @transform_2(%arg0: i32) -> (i32, i32) {
    %c0_i32 = arith.constant 0 : i32
    %c0_i32_0 = arith.constant 0 : i32
    %c0_i32_1 = arith.constant 0 : i32
    return %c0_i32, %c0_i32_0 : i32, i32
  }
  func.func @transform_3(%arg0: i32) -> (i32, i32) {
    %c0_i32 = arith.constant 0 : i32
    %c0_i32_0 = arith.constant 0 : i32
    %c0_i32_1 = arith.constant 0 : i32
    return %c0_i32, %c0_i32_0 : i32, i32
  }
  func.func @transform_4(%arg0: i32) -> (i32, i32) {
    %c0_i32 = arith.constant 0 : i32
    %c0_i32_0 = arith.constant 0 : i32
    %c0_i32_1 = arith.constant 0 : i32
    return %c0_i32, %c0_i32_0 : i32, i32
  }
  func.func @transform_5(%arg0: i32) -> (i32, i32) {
    %c0_i32 = arith.constant 0 : i32
    %c0_i32_0 = arith.constant 0 : i32
    %c0_i32_1 = arith.constant 0 : i32
    return %c0_i32, %c0_i32_0 : i32, i32
  }
  func.func @transform_6(%arg0: i32) -> (i32, i32) {
    %c0_i32 = arith.constant 0 : i32
    %c0_i32_0 = arith.constant 0 : i32
    %c0_i32_1 = arith.constant 0 : i32
    return %c0_i32, %c0_i32_0 : i32, i32
  }
  func.func @transform_7(%arg0: i32) -> (i32, i32) {
    %c0_i32 = arith.constant 0 : i32
    %c0_i32_0 = arith.constant 0 : i32
    return %arg0, %c0_i32 : i32, i32
  }
}

</mosaic_0001>

<bundles_post_ra>
// kernel: tpu_custom_call.1
= control target key start
LH: loop header
LB: loop body
LE: loop exit
PB: predicated region body
PF: predicated region fallthrough
CT: control target
= control target key end

     0   :  { %12 = vsyncpa [#allocation3], 0  ;;  %s4459_s0 = inlined_call_operand.hbm [shape: f32[16,16], index: 0, kind: input, shape index: {}]   ;;  %s4460_s1 = inlined_call_operand.hbm [shape: f32[16,128], index: 1, kind: input, shape index: {}]   ;;  %s4461_s2 = inlined_call_operand.vmem [shape: f32[1,128], index: 2, kind: input, shape index: {}]   ;;  %s4462_s3 = inlined_call_operand.hbm [shape: f32[128,128], index: 3, kind: input, shape index: {}]   ;;  %s4463_s4 = inlined_call_operand.vmem [shape: f32[1,128], index: 4, kind: input, shape index: {}]   ;;  %s4464_s5 = inlined_call_operand.hbm [shape: f32[128,128], index: 5, kind: input, shape index: {}]   ;;  %s4465_s6 = inlined_call_operand.vmem [shape: f32[1,128], index: 6, kind: input, shape index: {}]   ;;  %s4466_s7 = inlined_call_operand.hbm [shape: f32[16,128], index: 7, kind: output, shape index: {}]  }
   0x1   :  { %14 = vsyncpa [#allocation3 + $0x1], 0 }
   0x2   :  { %15 = vsyncpa [#allocation6], 0 }
   0x3   :  { %16 = vsyncpa [#allocation9], 0 }
   0x4   :  { %17 = vsyncpa [#allocation4], 0 }
   0x5   :  { %19 = vsyncpa [#allocation4 + $0x1], 0  ;;  %s3626_s24 = smov 0   ;;  %s3628_s25 = smov 0  }
   0x6   :  { %s3630_s26 = smov 0   ;;  %s3632_s27 = smov 0  }
   0x7 LB: > { %s3647_s28 = sadd.s32 4294967295, %s3574_s27   ;;  %s2261_s29 = sadd.s32 4294967294, %s3574_s27   ;;  %s3574_s27 = sphi %s3632_s27, %s4524_s27   ;;  %s3570_s26 = sphi %s3630_s26, %s4523_s26   ;;  %s3566_s25 = sphi %s3628_s25, %s4522_s25   ;;  %s3562_s24 = sphi %s3626_s24, %s4521_s24  }
   0x8   : > { %p45_p0 = scmp.ne.s32.totalorder %s3566_s25, %s3562_s24  ;;  %p4467_p1 = scmp.eq.s32.totalorder %s3647_s28, 0 }
   0x9   : > { %p201_p3 = scmp.eq.s32.totalorder %s2261_s29, 1  ;;  %p2262_p5 = scmp.ge.s32.totalorder %s3574_s27, 1 }
   0xa   : > { %p3656_p4 = por %p4467_p1, %p45_p0  ;;  %p208_p7 = scmp.lt.s32.totalorder %s3574_s27, 3 }
   0xb   : > { %p3661_p6 = por %p201_p3, %p45_p0  ;;  %s3576_s10 = smov [#allocation5]  }
   0xc   : > { %s4487_s30 = scalar_select %p3656_p4, 1, 0 }
   0xd   : > { %s4488_s8 = scalar_select %p3661_p6, 1, 0 }
   0xe   : > { %p3666_p8 = pnand %p2262_p5, %p208_p7  ;;  %s220_s11 = sshll.u32 %s3576_s10, 4  ;;  %s3670_s11 = int_to_ptr.vmem [resolvable:$true] %s220_s11 }
   0xf   : > { %4489 = sst [smem:[#allocation15_spill]] %s4488_s8  ;;  %s3577_s13 = smov [#allocation7]  }
  0x10   : > { %s4490_s9 = scalar_select %p3666_p8, 1, 0 }
  0x11   : > { %p3320_p9 = pneg %p3666_p8  ;;  %s236_s14 = sshll.u32 %s3577_s13, 4  ;;  %s3681_s14 = int_to_ptr.vmem [resolvable:$true] %s236_s14 }
  0x12   : > { %s3578_s15 = smov [#allocation8]   ;;  %s3386_s19 = scalar_lea.hbm %s4460_s1, 256 }
  0x13   : > { %p3677_p11 = pnand %p3320_p9, %p4467_p1  ;;  %s3683_s16 = sshll.u32 %s3578_s15, 4  ;;  %s253_s16 = int_to_ptr.vmem [resolvable:$true] %s3683_s16 }
  0x14   : > { %p3387_p12 = scmp.ne.s32.totalorder %s4460_s1, %s3386_s19  ;;  %p3393_p5 = scmp.lt.u32.totalorder %s3386_s19, %s4460_s1 }
  0x15   : > { %p3693_p13 = pneg %p3677_p11 }
  0x17   : > { %p3389_p0 = pnand %p3693_p13, %p3387_p12 }
  0x19   : > { %p3390_p3 = pneg %p3389_p0 }
  0x1b   : > { %p3395_p7 = pnand %p3393_p5, %p3390_p3 }
  0x1d   : > { %3398 = shalt.err (!%p3395_p7)
}
  0x1e   : > { %s3399_s10 = scalar_lea.vmem %s3670_s11, 256  ;;  %p3407_p2 = scmp.lt.s32.totalorder %s3670_s11, %s3670_s11 }
  0x1f   : > { %p3400_p9 = scmp.ne.s32.totalorder %s3670_s11, %s3399_s10  ;;  %p3408_p6 = scmp.lt.s32.totalorder %s3399_s10, %s3399_s10 }
  0x21   : > { %p3402_p10 = pnand %p3400_p9, %p3693_p13  ;;  %p3409_p12 = por %p3408_p6, %p3407_p2 }
  0x23   : > { %p3403_p1 = pneg %p3402_p10 }
  0x25   : > { %p3410_p0 = pnand %p3409_p12, %p3403_p1 }
  0x27   : > { %3413 = shalt.err (!%p3410_p0)
}
  0x28   : > { %s3579_s13 = smov 128   ;;  %s3580_s15 = smov 8  }
  0x29   : > { %3323 = dma.hbm_to_vmem [thread:$0]  (!%p3677_p11), %s4460_s1, 256, %s3670_s11, [#allocation6], %s3579_s13, %s3579_s13, %s3580_s15  }
  0x2a   : > { %s3414_s21 = scalar_lea.hbm %s4462_s3, 2048 }
  0x2b   : > { %p3415_p1 = scmp.ne.s32.totalorder %s4462_s3, %s3414_s21  ;;  %p3421_p10 = scmp.lt.u32.totalorder %s3414_s21, %s4462_s3 }
  0x2d   : > { %p3417_p2 = pnand %p3415_p1, %p3693_p13 }
  0x2f   : > { %p3418_p6 = pneg %p3417_p2 }
  0x31   : > { %p3423_p3 = pnand %p3421_p10, %p3418_p6 }
  0x33   : > { %3426 = shalt.err (!%p3423_p3)
}
  0x34   : > { %s3427_s11 = scalar_lea.vmem %s3681_s14, 2048  ;;  %p3435_p12 = scmp.lt.s32.totalorder %s3681_s14, %s3681_s14 }
  0x35   : > { %p3428_p5 = scmp.ne.s32.totalorder %s3681_s14, %s3427_s11  ;;  %p3436_p0 = scmp.lt.s32.totalorder %s3427_s11, %s3427_s11 }
  0x37   : > { %p3430_p7 = pnand %p3428_p5, %p3693_p13  ;;  %p3437_p1 = por %p3436_p0, %p3435_p12 }
  0x39   : > { %p3431_p9 = pneg %p3430_p7 }
  0x3b   : > { %p3438_p2 = pnand %p3437_p1, %p3431_p9 }
  0x3d   : > { %3441 = shalt.err (!%p3438_p2)
}
  0x3e   : > { %3326 = dma.hbm_to_vmem [thread:$0]  (!%p3677_p11), %s4462_s3, 2048, %s3681_s14, [#allocation6], %s3579_s13, %s3579_s13, %s3580_s15  }
  0x3f   : > { %s3442_s20 = scalar_lea.hbm %s4464_s5, 2048 }
  0x40   : > { %p3443_p6 = scmp.ne.s32.totalorder %s4464_s5, %s3442_s20  ;;  %p3449_p5 = scmp.lt.u32.totalorder %s3442_s20, %s4464_s5 }
  0x42   : > { %p3445_p10 = pnand %p3443_p6, %p3693_p13 }
  0x44   : > { %p3446_p3 = pneg %p3445_p10 }
  0x46   : > { %p3451_p7 = pnand %p3449_p5, %p3446_p3 }
  0x48   : > { %3454 = shalt.err (!%p3451_p7)
}
  0x49   : > { %s3455_s11 = scalar_lea.vmem %s253_s16, 2048  ;;  %p3463_p1 = scmp.lt.s32.totalorder %s253_s16, %s253_s16 }
  0x4a   : > { %p3456_p9 = scmp.ne.s32.totalorder %s253_s16, %s3455_s11  ;;  %p3464_p2 = scmp.lt.s32.totalorder %s3455_s11, %s3455_s11 }
  0x4c   : > { %p3458_p12 = pnand %p3456_p9, %p3693_p13  ;;  %p3465_p4 = por %p3464_p2, %p3463_p1 }
  0x4e   : > { %p3459_p0 = pneg %p3458_p12 }
  0x50   : > { %p3466_p8 = pnand %p3465_p4, %p3459_p0 }
  0x52   : > { %3469 = shalt.err (!%p3466_p8)
}
  0x53   : > { %3329 = dma.hbm_to_vmem [thread:$0]  (!%p3677_p11), %s4464_s5, 2048, %s253_s16, [#allocation9], %s3579_s13, %s3579_s13, %s3580_s15  }
  0x54   : > { %s3766_s22 = sadd.s32 1, %s3574_s27   ;;  %s32_s17 = sadd.s32 1, %s3570_s26 }
  0x55   : > { %s29_s12 = ssub.s32 %s3574_s27, %s3766_s22  ;;  %p39_p8 = scmp.ne.s32.totalorder %s3570_s26, %s3566_s25 }
  0x56   : > { %p30_p4 = scmp.eq.s32.totalorder %s29_s12, 0  ;;  %p40_p13 = scmp.eq.s32.totalorder %s3574_s27, 0 }
  0x57   : > { %p3341_p6 = scmp.lt.s32.totalorder %s3574_s27, 2  ;;  %p4493_p3 = scmp.eq.s32.totalorder %s3647_s28, 1 }
  0x58   : > { %s3776_s18 = scalar_select %p30_p4, %s3570_s26, %s32_s17  }
  0x59   : > { %p41_p10 = por %p40_p13, %p39_p8  ;;  %p3780_p5 = por %p4493_p3, %p39_p8 }
  0x5a   : > { %s269_s20 = sand.u32 1, %s3570_s26   ;;  %s2268_s21 = sshll.u32 %s3574_s27, 7 }
  0x5b   : > { %s2267_s16 = sshll.u32 %s269_s20, 3  ;;  %s3789_s23 = scalar_lea.hbm %s4459_s0, %s2268_s21 }
  0x5c   : > { %s273_s29 = scalar_lea.vmem [#allocation2], %s2267_s16  ;;  %p3791_p11 = pnand %p3341_p6, %p41_p10 }
  0x5d   : > { %s280_s10 = sshll.u32 %s273_s29, 4  ;;  %s270_s14 = scalar_lea.sflag [#allocation3], %s269_s20  ;;  %s3795_s10 = int_to_ptr.vmem [resolvable:$true] %s280_s10 }
  0x5e   : > { %s3470_s8 = scalar_lea.hbm %s3789_s23, 128  ;;  %p3472_p9 = pneg %p3791_p11 }
  0x5f   : > { %p3471_p7 = scmp.ne.s32.totalorder %s3789_s23, %s3470_s8  ;;  %s3475_s21 = scalar_lea.hbm %s4459_s0, 256 }
  0x60   : > { %p3476_p1 = scmp.lt.u32.totalorder %s3789_s23, %s4459_s0  ;;  %p3477_p2 = scmp.lt.u32.totalorder %s3475_s21, %s3470_s8 }
  0x61   : > { %p3473_p12 = pnand %p3472_p9, %p3471_p7  ;;  %p3479_p8 = scmp.lt.u32.totalorder %s3470_s8, %s3789_s23 }
  0x62   : > { %p3478_p4 = por %p3477_p2, %p3476_p1 }
  0x63   : > { %p3474_p0 = pneg %p3473_p12 }
  0x64   : > { %p3480_p13 = por %p3479_p8, %p3478_p4 }
  0x66   : > { %p3481_p6 = pnand %p3480_p13, %p3474_p0 }
  0x68   : > { %3484 = shalt.err (!%p3481_p6)
}
  0x69   : > { %s3485_s20 = scalar_lea.vmem %s3795_s10, 128  ;;  %s3581_s15 = smov [#allocation2]  }
  0x6a   : > { %p3486_p10 = scmp.ne.s32.totalorder %s3795_s10, %s3485_s20  ;;  %s3490_s29 = sshll.u32 %s3581_s15, 4  ;;  %s3491_s29 = int_to_ptr.vmem [resolvable:$false] %s3490_s29 }
  0x6b   : > { %s3492_s12 = scalar_lea.vmem %s3491_s29, 256  ;;  %p3493_p12 = scmp.lt.s32.totalorder %s3795_s10, %s3491_s29 }
  0x6c   : > { %p3488_p3 = pnand %p3486_p10, %p3472_p9  ;;  %p3494_p1 = scmp.lt.s32.totalorder %s3492_s12, %s3485_s20 }
  0x6e   : > { %p3489_p7 = pneg %p3488_p3  ;;  %p3495_p2 = por %p3494_p1, %p3493_p12 }
  0x70   : > { %p3496_p4 = pnand %p3495_p2, %p3489_p7 }
  0x72   : > { %3499 = shalt.err (!%p3496_p4)
}
  0x73   : > { %3333 = dma.hbm_to_vmem [thread:$0]  (!%p3791_p11), %s3789_s23, 128, %s3795_s10, %s270_s14  }
  0x74   : > { %p4496_p0 = scmp.ne.s32.totalorder %s4490_s9, 0 }
  0x75   : > { %s3825_s8 = sand.u32 (!%p4496_p0), 1, %s3566_s25   ;;  %p4497_p9 = scmp.ne.s32.totalorder (!%p4496_p0), %s4487_s30, 0 }
  0x76   : > { %289 = sbr.rel (%p4496_p0) target bundleno = 1169 (0x491), region = 48  ;;  %s2270_s17 = sshll.u32 (!%p4496_p0), %s3825_s8, 3 }
  0x77   : > { %s292_s21 = scalar_lea.sflag (!%p4496_p0), [#allocation3], %s3825_s8  ;;  %s295_s16 = scalar_lea.vmem (!%p4496_p0), [#allocation2], %s2270_s17 }
  0x7d   : > { %3545 = dma.done.wait (%p4497_p9), %s292_s21, 128  }
  0x7e   : > { %3547 = vsyncadd (%p4497_p9), %s292_s21, 4294967168  ;;  %p4498_p11 = scmp.eq.s32.totalorder %s3647_s28, 0 }
  0x80   : > { %3549 = dma.done.wait (%p4498_p11), [#allocation6], 2304   ;;  %p4499_p8 = pmov %p4498_p11 }
  0x82   : > { %3551 = vsyncadd (%p4499_p8), [#allocation6], 4294964992  ;;  %p4500_p13 = pmov %p4499_p8 }
  0x83   : > { %p4501_p6 = pmov %p4499_p8 }
  0x84   : > { %3553 = dma.done.wait (%p4500_p13), [#allocation9], 2048  }
  0x85   : > { %3555 = vsyncadd (%p4501_p6), [#allocation9], 4294965248  ;;  %v3582_v0 = vmov 0.0|0.0   ;;  %vm3583_vm0 = vmmov 0   ;;  %v3584_v1 = vmov 0.0   ;;  %vm350_vm1 = vcmask 130048  }
  0x86   : > { %2975 = vmatprep.subr.bf16.mxu0 %v3582_v0  ;;  %2529 = vmatprep.mubr.msk.f32.mxu0 %vm3583_vm0, %v3584_v1  ;;  %v342_v2 = vld [vmem:[#allocation5] sm:$0xff]  ;;  %v343_v3 = vld [vmem:[#allocation5 + $0x8] sm:$0xff]  ;;  %v341_v4 = vld [vmem:[%s295_s16] sm:$0xff]  ;;  %s2279_s13 = sshll.u32 %s3647_s28, 7  ;;  %s337_s20 = scalar_lea.vmem [#allocation10], %s2270_s17 }
  0x87   : > { %2966 = vmatprep.subr.bf16.mxu1 %v3582_v0  ;;  %2508 = vmatprep.mubr.msk.f32.mxu1 %vm3583_vm0, %v3584_v1  ;;  %v355_v5 = vand.u32 4294901760, %v342_v2  ;;  %v358_v6 = vand.u32 4294901760, %v343_v3  ;;  %v352_v7 = vsel %vm350_vm1, %v341_v4, 0  ;;  %v814_v8 = vld [vmem:[#allocation7] sm:$0xff]  ;;  %v815_v9 = vld [vmem:[#allocation7 + $0x8] sm:$0xff]  ;;  %v816_v10 = vld [vmem:[#allocation7 + $0x10] sm:$0xff]  ;;  %s4415_s21 = scalar_lea.hbm %s4466_s7, %s2279_s13 }
  0x88   : > { %v421_v11 = vand.u32 4294901760, %v352_v7  ;;  %v837_v12 = vand.u32 4294901760, %v814_v8  ;;  %v840_v13 = vand.u32 4294901760, %v815_v9  ;;  %v817_v14 = vld [vmem:[#allocation7 + $0x18] sm:$0xff]  ;;  %v843_v18 = vand.u32 4294901760, %v816_v10  ;;  %v818_v19 = vld [vmem:[#allocation7 + $0x20] sm:$0xff] }
  0x89   : > { %v2967_v15 = vpack.c.bf16 %v358_v6, %v355_v5  ;;  %v433_v16 = vsub.f32 %v342_v2, %v355_v5  ;;  %v440_v17 = vsub.f32 %v343_v3, %v358_v6  ;;  %v846_v23 = vand.u32 4294901760, %v817_v14  ;;  %v819_v24 = vld [vmem:[#allocation7 + $0x28] sm:$0xff]  ;;  %v820_v46 = vld [vmem:[#allocation7 + $0x30] sm:$0xff]  ;;  %v821_v47 = vld [vmem:[#allocation7 + $0x38] sm:$0xff]  ;;  %s2162_s15 = sshll.u32 %s337_s20, 4  ;;  %s2149_s16 = scalar_lea.sflag [#allocation4], %s3825_s8  ;;  %s4417_s15 = int_to_ptr.vmem [resolvable:$true] %s2162_s15 }
  0x8a   : > { %v422_v20 = vsub.f32 %v352_v7, %v421_v11  ;;  %v3849_v21 = vsub.f32 %v814_v8, %v837_v12  ;;  %v3851_v22 = vsub.f32 %v815_v9, %v840_v13  ;;  %v3855_v28 = vsub.f32 %v816_v10, %v843_v18  ;;  %v822_v51 = vld [vmem:[#allocation7 + $0x40] sm:$0xff]  ;;  %v823_v52 = vld [vmem:[#allocation7 + $0x48] sm:$0xff]  ;;  %v824_v58 = vld [vmem:[#allocation7 + $0x50] sm:$0xff]  ;;  %s3500_s30 = scalar_lea.vmem %s4417_s15, 128  ;;  %s3585_s28 = smov [#allocation10]  }
  0x8b   : > { %2977 = vmatpush3.bf16.msra.mxu0 %v2967_v15  ;;  %2968 = vmatpush3.bf16.msra.mxu1 %v2967_v15  ;;  %v434_v25 = vand.u32 4294901760, %v433_v16  ;;  %v441_v26 = vand.u32 4294901760, %v440_v17  ;;  %v3857_v29 = vsub.f32 %v817_v14, %v846_v23  ;;  %v849_v30 = vand.u32 4294901760, %v818_v19  ;;  %v825_v59 = vld [vmem:[#allocation7 + $0x58] sm:$0xff]  ;;  %v826_v63 = vld [vmem:[#allocation7 + $0x60] sm:$0xff]  ;;  %v827_v2 = vld [vmem:[#allocation7 + $0x68] sm:$0xff]  ;;  %p3501_p10 = scmp.ne.s32.totalorder %s4417_s15, %s3500_s30 }
  0x8c   : > { %v423_v27 = vand.u32 4294901760, %v422_v20  ;;  %2969 = vmatprep.subr.bf16.mxu1 %v3582_v0  ;;  %2978 = vmatprep.subr.bf16.mxu0 %v3582_v0  ;;  %v852_v34 = vand.u32 4294901760, %v819_v24  ;;  %v2973_v42 = vpack.c.bf16 %v440_v17, %v433_v16  ;;  %v3875_v43 = vpack.c.bf16 %v840_v13, %v837_v12  ;;  %v828_v6 = vld [vmem:[#allocation7 + $0x70] sm:$0xff]  ;;  %v829_v7 = vld [vmem:[#allocation7 + $0x78] sm:$0xff]  ;;  %s3504_s17 = sshll.u32 %s3585_s28, 4  ;;  %s3505_s17 = int_to_ptr.vmem [resolvable:$false] %s3504_s17 }
  0x8d   : > { %v435_v31 = vsub.f32 %v433_v16, %v434_v25  ;;  %v442_v32 = vsub.f32 %v440_v17, %v441_v26  ;;  %v2979_v33 = vpack.c.bf16 %v441_v26, %v434_v25  ;;  %v3859_v36 = vsub.f32 %v818_v19, %v849_v30  ;;  %p3502_p3 = pnand %p3501_p10, %p3780_p5  ;;  %s3506_s9 = scalar_lea.vmem %s3505_s17, 256 }
  0x8e   : > { %2530 = vmatmul.mubr.f32.vlgmr.msra.gmra.mrb[0].mxu0 %v423_v27  ;;  %v424_v35 = vsub.f32 %v422_v20, %v423_v27  ;;  %v3863_v39 = vsub.f32 %v819_v24, %v852_v34  ;;  %v3880_v44 = vpack.c.bf16 %v846_v23, %v843_v18  ;;  %v3886_v45 = vpack.c.bf16 %v852_v34, %v849_v30  ;;  %p3507_p12 = scmp.lt.s32.totalorder %s4417_s15, %s3505_s17  ;;  %p3508_p1 = scmp.lt.s32.totalorder %s3506_s9, %s3500_s30 }
  0x8f   : > { %v436_v37 = vand.u32 4294901760, %v435_v31  ;;  %v443_v38 = vand.u32 4294901760, %v442_v32  ;;  %2980 = vmatpush3.bf16.msra.mxu0 %v2979_v33  ;;  %2536 = vmatprep.mubr.msk.f32.mxu0 %vm3583_vm0, %v3584_v1  ;;  %v855_v48 = vand.u32 4294901760, %v820_v46  ;;  %v858_v49 = vand.u32 4294901760, %v821_v47  ;;  %p3503_p7 = pneg %p3502_p3 }
  0x90   : > { %v425_v40 = vand.u32 4294901760, %v424_v35  ;;  %2981 = vmatprep.subr.bf16.mxu0 %v3582_v0  ;;  %v861_v55 = vand.u32 4294901760, %v822_v51  ;;  %v864_v56 = vand.u32 4294901760, %v823_v52  ;;  %v867_v60 = vand.u32 4294901760, %v824_v58  ;;  %p3509_p2 = por %p3508_p1, %p3507_p12 }
  0x91   : > { %v2970_v41 = vpack.c.bf16 %v443_v38, %v436_v37  ;;  %v3891_v50 = vpack.c.bf16 %v858_v49, %v855_v48  ;;  %v3894_v53 = vsub.f32 %v820_v46, %v855_v48  ;;  %v3896_v54 = vsub.f32 %v821_v47, %v858_v49 }
  0x92   : > { %2509 = vmatmul.mubr.f32.vlgmr.msra.gmra.mrb[0].mxu1 %v425_v40  ;;  %v3899_v57 = vpack.c.bf16 %v864_v56, %v861_v55  ;;  %v870_v61 = vand.u32 4294901760, %v825_v59  ;;  %v873_v3 = vand.u32 4294901760, %v826_v63  ;;  %v876_v4 = vand.u32 4294901760, %v827_v2  ;;  %p3510_p4 = pnand %p3509_p2, %p3503_p7 }
  0x93   : > { %2971 = vmatpush3.bf16.msra.mxu1 %v2970_v41  ;;  %2515 = vmatprep.mubr.msk.f32.mxu1 %vm3583_vm0, %v3584_v1  ;;  %v879_v8 = vand.u32 4294901760, %v828_v6  ;;  %v882_v9 = vand.u32 4294901760, %v829_v7  ;;  %v930_v10 = vand.u32 4294901760, %v3849_v21  ;;  %v3913_v12 = vsub.f32 %v822_v51, %v861_v55 }
  0x94   : > { %2972 = vmatprep.subr.bf16.mxu1 %v3582_v0  ;;  %v3903_v62 = vpack.c.bf16 %v870_v61, %v867_v60  ;;  %v3907_v5 = vpack.c.bf16 %v876_v4, %v873_v3  ;;  %v3915_v13 = vsub.f32 %v823_v52, %v864_v56  ;;  %v3917_v14 = vsub.f32 %v824_v58, %v867_v60 }
  0x95   : > { %v3921_v16 = vsub.f32 %v826_v63, %v873_v3  ;;  %v3923_v17 = vsub.f32 %v827_v2, %v876_v4  ;;  %v3925_v18 = vpack.c.bf16 %v882_v9, %v879_v8  ;;  %v3927_v19 = vsub.f32 %v828_v6, %v879_v8 }
  0x96   : > { %2537 = vmatmul.mubr.f32.vlgmr.msra.gmra.mrb[0].mxu0 %v421_v11  ;;  %v931_v23 = vsub.f32 %v3849_v21, %v930_v10  ;;  %v944_v25 = vand.u32 4294901760, %v3855_v28  ;;  %v951_v26 = vand.u32 4294901760, %v3857_v29  ;;  %v4482_v37 = vand.u32 4294901760, %v3859_v36 }
  0x97   : > { %2983 = vmatpush3.bf16.msra.mxu0 %v2967_v15  ;;  %2543 = vmatprep.mubr.msk.f32.mxu0 %vm3583_vm0, %v3584_v1  ;;  %v3919_v15 = vsub.f32 %v825_v59, %v870_v61  ;;  %v4481_v38 = vand.u32 4294901760, %v3863_v39  ;;  %v4480_v48 = vand.u32 4294901760, %v3894_v53  ;;  %v4479_v49 = vand.u32 4294901760, %v3896_v54 }
  0x98   : > { %3128 = vmatprep.subr.bf16.mxu0 %v3582_v0  ;;  %v932_v27 = vand.u32 4294901760, %v931_v23  ;;  %v945_v31 = vsub.f32 %v3855_v28, %v944_v25  ;;  %v952_v32 = vsub.f32 %v3857_v29, %v951_v26  ;;  %v959_v41 = vsub.f32 %v3859_v36, %v4482_v37 }
  0x99   : > { %v973_v52 = vsub.f32 %v3894_v53, %v4480_v48  ;;  %v980_v55 = vsub.f32 %v3896_v54, %v4479_v49  ;;  %v4478_v59 = vand.u32 4294901760, %v3913_v12  ;;  %v4477_v60 = vand.u32 4294901760, %v3915_v13 }
  0x9a   : > { %2516 = vmatmul.mubr.f32.vlgmr.msra.gmra.mrb[0].mxu1 %v421_v11  ;;  %v946_v34 = vand.u32 4294901760, %v945_v31  ;;  %v953_v35 = vand.u32 4294901760, %v952_v32  ;;  %v960_v46 = vand.u32 4294901760, %v959_v41  ;;  %v4476_v6 = vand.u32 4294901760, %v3917_v14 }
  0x9b   : > { %2974 = vmatpush3.bf16.msra.mxu1 %v2973_v42  ;;  %2522 = vmatprep.mubr.msk.f32.mxu1 %vm3583_vm0, %v3584_v1  ;;  %v966_v42 = vsub.f32 %v3863_v39, %v4481_v38  ;;  %v974_v56 = vand.u32 4294901760, %v973_v52  ;;  %v981_v58 = vand.u32 4294901760, %v980_v55  ;;  %v987_v63 = vsub.f32 %v3913_v12, %v4478_v59  ;;  %v1487_v59 = vld [vmem:[#allocation8 + $0x48] sm:$0xff] }
  0x9c   : > { %2984 = vmatprep.subr.bf16.mxu1 %v3582_v0  ;;  %v3951_v40 = vpack.c.bf16 %v953_v35, %v946_v34  ;;  %v994_v2 = vsub.f32 %v3915_v13, %v4477_v60  ;;  %v4473_v31 = vand.u32 4294901760, %v3923_v17 }
  0x9d   : > { %v967_v47 = vand.u32 4294901760, %v966_v42  ;;  %v3018_v61 = vpack.c.bf16 %v981_v58, %v974_v56  ;;  %v988_v3 = vand.u32 4294901760, %v987_v63 }
  0x9e   : > { %2544 = vmatmul.mubr.f32.vlgmr.msra.gmra.mrb[0].mxu0 %v421_v11  ;;  %v937_v11 = vand.u32 4294901760, %v3851_v22  ;;  %v995_v4 = vand.u32 4294901760, %v994_v2  ;;  %v1022_v35 = vsub.f32 %v3923_v17, %v4473_v31 }
  0x9f   : > { %2788 = vmatprep.mubr.msk.f32.mxu0 %vm3583_vm0, %v3584_v1  ;;  %v3015_v51 = vpack.c.bf16 %v967_v47, %v960_v46  ;;  %v4472_v46 = vand.u32 4294901760, %v3927_v19 }
  0xa0   : > { %v938_v24 = vsub.f32 %v3851_v22, %v937_v11  ;;  %v3021_v8 = vpack.c.bf16 %v995_v4, %v988_v3  ;;  %v1023_v42 = vand.u32 4294901760, %v1022_v35  ;;  %v3033_v3 = vpack.c.bf16 %v3851_v22, %v3849_v21 }
  0xa1   : > { %v1029_v55 = vsub.f32 %v3927_v19, %v4472_v46  ;;  %v3036_v4 = vpack.c.bf16 %v3857_v29, %v3855_v28  ;;  %v4502_v21 = vand.u32 4294901760, %v3859_v36  ;;  %v4503_v22 = vand.u32 4294901760, %v3863_v39 }
  0xa2   : > { %2523 = vmatmul.mubr.f32.vlgmr.msra.gmra.mrb[0].mxu1 %v422_v20  ;;  %v3929_v20 = vsub.f32 %v829_v7, %v882_v9  ;;  %v939_v30 = vand.u32 4294901760, %v938_v24  ;;  %v4475_v7 = vand.u32 4294901760, %v3919_v15  ;;  %v1001_v9 = vsub.f32 %v3917_v14, %v4476_v6 }
  0xa3   : > { %2986 = vmatpush3.bf16.msra.mxu1 %v3875_v43  ;;  %2578 = vmatprep.mubr.msk.f32.mxu1 %vm3583_vm0, %v3584_v1  ;;  %v1030_v58 = vand.u32 4294901760, %v1029_v55  ;;  %v2275_v55 = vld [vmem:[%s4461_s2] ss:$0 sm:$0xff]  ;;  %v4505_v28 = vand.u32 4294901760, %v3896_v54 }
  0xa4   : > { %2987 = vmatprep.subr.bf16.mxu1 %v3582_v0  ;;  %v3947_v33 = vpack.c.bf16 %v939_v30, %v932_v27  ;;  %v1008_v23 = vsub.f32 %v3919_v15, %v4475_v7  ;;  %v1002_v24 = vand.u32 4294901760, %v1001_v9  ;;  %v4474_v30 = vand.u32 4294901760, %v3921_v16 }
  0xa5   : > { %v4471_v47 = vand.u32 4294901760, %v3929_v20  ;;  %v3039_v9 = vpack.c.bf16 %v3863_v39, %v3859_v36  ;;  %v3054_v35 = vpack.c.bf16 %v3929_v20, %v3927_v19  ;;  %v4508_v36 = vand.u32 4294901760, %v3917_v14 }
  0xa6   : > { %v1009_v27 = vand.u32 4294901760, %v1008_v23  ;;  %v1015_v34 = vsub.f32 %v3921_v16, %v4474_v30  ;;  %v3042_v23 = vpack.c.bf16 %v3896_v54, %v3894_v53  ;;  %v4509_v39 = vand.u32 4294901760, %v3919_v15 }
  0xa7   : > { %2989 = vmatpush3.bf16.msra.mxu1 %v3880_v44  ;;  %v1036_v56 = vsub.f32 %v3929_v20, %v4471_v47  ;;  %v4511_v54 = vand.u32 4294901760, %v3923_v17 }
  0xa8   : > { %2990 = vmatprep.subr.bf16.mxu1 %v3582_v0  ;;  %v3024_v32 = vpack.c.bf16 %v1009_v27, %v1002_v24  ;;  %v1016_v41 = vand.u32 4294901760, %v1015_v34  ;;  %v3045_v24 = vpack.c.bf16 %v3915_v13, %v3913_v12  ;;  %v3048_v27 = vpack.c.bf16 %v3919_v15, %v3917_v14  ;;  %v1491_v15 = vld [vmem:[#allocation8 + $0x68] sm:$0xff] }
  0xa9   : > { %v1037_v63 = vand.u32 4294901760, %v1036_v56  ;;  %v3051_v34 = vpack.c.bf16 %v3923_v17, %v3921_v16  ;;  %v1492_v17 = vld [vmem:[#allocation8 + $0x70] sm:$0xff] }
  0xaa   : > { %v3027_v52 = vpack.c.bf16 %v1023_v42, %v1016_v41 }
  0xab   : > { %2992 = vmatpush3.bf16.msra.mxu1 %v3886_v45  ;;  %v3030_v2 = vpack.c.bf16 %v1037_v63, %v1030_v58 }
  0xac   : > { %2993 = vmatprep.subr.bf16.mxu1 %v3582_v0 }
  0xaf   : > { %2995 = vmatpush3.bf16.msra.mxu1 %v3891_v50 }
  0xb0   : > { %2996 = vmatprep.subr.bf16.mxu1 %v3582_v0 }
  0xb3   : > { %2998 = vmatpush3.bf16.msra.mxu1 %v3899_v57 }
  0xb4   : > { %2999 = vmatprep.subr.bf16.mxu1 %v3582_v0 }
  0xb7   : > { %3001 = vmatpush3.bf16.msra.mxu1 %v3903_v62 }
  0xb8   : > { %3002 = vmatprep.subr.bf16.mxu1 %v3582_v0 }
  0xbb   : > { %3004 = vmatpush3.bf16.msra.mxu1 %v3907_v5 }
  0xbc   : > { %3005 = vmatprep.subr.bf16.mxu1 %v3582_v0 }
  0xbf   : > { %3007 = vmatpush3.bf16.msra.mxu1 %v3925_v18 }
  0xc0   : > { %3008 = vmatprep.subr.bf16.mxu1 %v3582_v0 }
 0x171   : > { %v809_v41 = vpop.f32.mrb[0].mxu0 }
 0x172   : > { %v2545_v42 = vpop.f32.mrb[1].mxu0 }
 0x175   : > { %v584_v56 = vpop.f32.mrb[0].mxu1 }
 0x176   : > { %v3272_v58 = vadd.f32 %v2275_v55, %v584_v56  ;;  %v2524_v63 = vpop.f32.mrb[1].mxu1  ;;  %v1484_v55 = vld [vmem:[#allocation8 + $0x30] sm:$0xff]  ;;  %v1485_v56 = vld [vmem:[#allocation8 + $0x38] sm:$0xff] }
 0x178   : > { %v3273_v47 = vadd.f32 %v3272_v58, %v809_v41  ;;  %v1486_v58 = vld [vmem:[#allocation8 + $0x40] sm:$0xff] }
 0x17a   : > { %v813_v46 = vmax.f32 %v3273_v47, 0.0  ;;  %v1483_v47 = vld [vmem:[#allocation8 + $0x28] sm:$0xff] }
 0x17b   : > { %v1516_v41 = vand.u32 4294901760, %v1483_v47 }
 0x17c   : > { %v4018_v31 = vand.u32 4294901760, %v813_v46 }
 0x17d   : > { %v4061_v37 = vsub.f32 %v1483_v47, %v1516_v41 }
 0x17e   : > { %v4021_v30 = vsub.f32 %v813_v46, %v4018_v31  ;;  %v1482_v46 = vld [vmem:[#allocation8 + $0x20] sm:$0xff] }
 0x180   : > { %v919_v7 = vand.u32 4294901760, %v4021_v30 }
 0x182   : > { %v920_v42 = vsub.f32 %v4021_v30, %v919_v7 }
 0x184   : > { %v921_v6 = vand.u32 4294901760, %v920_v42 }
 0x186   : > { %2579 = vmatmul.mubr.f32.vlgmr.msra.gmra.mrb[2].mxu1 %v921_v6 }
 0x187   : > { %3010 = vmatpush3.bf16.msra.mxu1 %v3947_v33  ;;  %2613 = vmatprep.mubr.msk.f32.mxu1 %vm3583_vm0, %v3584_v1  ;;  %v1478_v33 = vld [vmem:[#allocation8] sm:$0xff] }
 0x188   : > { %3011 = vmatprep.subr.bf16.mxu1 %v3582_v0 }
 0x18b   : > { %3013 = vmatpush3.bf16.msra.mxu1 %v3951_v40  ;;  %v1479_v40 = vld [vmem:[#allocation8 + $0x8] sm:$0xff] }
 0x18c   : > { %3014 = vmatprep.subr.bf16.mxu1 %v3582_v0  ;;  %v1504_v6 = vand.u32 4294901760, %v1479_v40 }
 0x18e   : > { %v4047_v42 = vsub.f32 %v1479_v40, %v1504_v6  ;;  %v1522_v40 = vand.u32 4294901760, %v1485_v56 }
 0x18f   : > { %3016 = vmatpush3.bf16.msra.mxu1 %v3015_v51  ;;  %v1480_v51 = vld [vmem:[#allocation8 + $0x10] sm:$0xff] }
 0x190   : > { %3017 = vmatprep.subr.bf16.mxu1 %v3582_v0 }
 0x193   : > { %3019 = vmatpush3.bf16.msra.mxu1 %v3018_v61  ;;  %v1501_v61 = vand.u32 4294901760, %v1478_v33 }
 0x194   : > { %3020 = vmatprep.subr.bf16.mxu1 %v3582_v0 }
 0x195   : > { %v4043_v63 = vpack.c.bf16 %v1504_v6, %v1501_v61 }
 0x197   : > { %3022 = vmatpush3.bf16.msra.mxu1 %v3021_v8  ;;  %v1481_v8 = vld [vmem:[#allocation8 + $0x18] sm:$0xff]  ;;  %3130 = vmatpush3.bf16.msra.mxu0 %v4043_v63 }
 0x198   : > { %3023 = vmatprep.subr.bf16.mxu1 %v3582_v0  ;;  %3131 = vmatprep.subr.bf16.mxu0 %v3582_v0 }
 0x19b   : > { %3025 = vmatpush3.bf16.msra.mxu1 %v3024_v32  ;;  %v1507_v32 = vand.u32 4294901760, %v1480_v51 }
 0x19c   : > { %3026 = vmatprep.subr.bf16.mxu1 %v3582_v0 }
 0x19d   : > { %v4049_v60 = vsub.f32 %v1480_v51, %v1507_v32  ;;  %v1528_v51 = vand.u32 4294901760, %v1487_v59 }
 0x19f   : > { %3028 = vmatpush3.bf16.msra.mxu1 %v3027_v52  ;;  %v1510_v52 = vand.u32 4294901760, %v1481_v8 }
 0x1a0   : > { %3029 = vmatprep.subr.bf16.mxu1 %v3582_v0 }
 0x1a1   : > { %v4051_v49 = vpack.c.bf16 %v1510_v52, %v1507_v32  ;;  %v4053_v48 = vsub.f32 %v1481_v8, %v1510_v52  ;;  %v4067_v8 = vsub.f32 %v1485_v56, %v1522_v40 }
 0x1a3   : > { %3031 = vmatpush3.bf16.msra.mxu1 %v3030_v2  ;;  %v1513_v2 = vand.u32 4294901760, %v1482_v46  ;;  %3133 = vmatpush3.bf16.msra.mxu0 %v4051_v49 }
 0x1a4   : > { %3032 = vmatprep.subr.bf16.mxu1 %v3582_v0  ;;  %3134 = vmatprep.subr.bf16.mxu0 %v3582_v0 }
 0x1a5   : > { %v4055_v38 = vsub.f32 %v1482_v46, %v1513_v2  ;;  %v4071_v46 = vsub.f32 %v1487_v59, %v1528_v51 }
 0x1a6   : > { %2614 = vmatmul.mubr.f32.vlgmr.msra.gmra.mrb[2].mxu1 %v4018_v31 }
 0x1a7   : > { %3034 = vmatpush3.bf16.msra.mxu1 %v3033_v3  ;;  %2648 = vmatprep.mubr.msk.f32.mxu1 %vm3583_vm0, %v3584_v1  ;;  %v4045_v3 = vsub.f32 %v1478_v33, %v1501_v61  ;;  %v1519_v33 = vand.u32 4294901760, %v1484_v55  ;;  %v1525_v61 = vand.u32 4294901760, %v1486_v58 }
 0x1a8   : > { %3035 = vmatprep.subr.bf16.mxu1 %v3582_v0 }
 0x1a9   : > { %v4065_v6 = vsub.f32 %v1484_v55, %v1519_v33  ;;  %v4069_v32 = vsub.f32 %v1486_v58, %v1525_v61  ;;  %v4085_v59 = vpack.c.bf16 %v1522_v40, %v1519_v33 }
 0x1ab   : > { %3037 = vmatpush3.bf16.msra.mxu1 %v3036_v4  ;;  %v4077_v4 = vpack.c.bf16 %v1516_v41, %v1513_v2 }
 0x1ac   : > { %3038 = vmatprep.subr.bf16.mxu1 %v3582_v0 }
 0x1ad   : > { %3136 = vmatpush3.bf16.msra.mxu0 %v4077_v4 }
 0x1ae   : > { %3137 = vmatprep.subr.bf16.mxu0 %v3582_v0 }
 0x1af   : > { %3040 = vmatpush3.bf16.msra.mxu1 %v3039_v9  ;;  %v4093_v9 = vpack.c.bf16 %v1528_v51, %v1525_v61 }
 0x1b0   : > { %3041 = vmatprep.subr.bf16.mxu1 %v3582_v0 }
 0x1b1   : > { %3139 = vmatpush3.bf16.msra.mxu0 %v4085_v59 }
 0x1b2   : > { %3140 = vmatprep.subr.bf16.mxu0 %v3582_v0 }
 0x1b3   : > { %3043 = vmatpush3.bf16.msra.mxu1 %v3042_v23  ;;  %v3081_v23 = vpack.c.bf16 %v937_v11, %v930_v10  ;;  %v3087_v10 = vpack.c.bf16 %v4503_v22, %v4502_v21  ;;  %v4504_v11 = vand.u32 4294901760, %v3894_v53  ;;  %v4510_v53 = vand.u32 4294901760, %v3921_v16 }
 0x1b4   : > { %3044 = vmatprep.subr.bf16.mxu1 %v3582_v0  ;;  %v1540_v16 = vand.u32 4294901760, %v1491_v15 }
 0x1b5   : > { %3142 = vmatpush3.bf16.msra.mxu0 %v4093_v9  ;;  %v3090_v29 = vpack.c.bf16 %v4505_v28, %v4504_v11  ;;  %v1622_v11 = vand.u32 4294901760, %v4055_v38  ;;  %v1629_v28 = vand.u32 4294901760, %v4061_v37 }
 0x1b6   : > { %3143 = vmatprep.subr.bf16.mxu0 %v3582_v0  ;;  %v4217_v58 = vsub.f32 %v1491_v15, %v1540_v16 }
 0x1b7   : > { %3046 = vmatpush3.bf16.msra.mxu1 %v3045_v24  ;;  %v3084_v24 = vpack.c.bf16 %v951_v26, %v944_v25  ;;  %v4506_v25 = vand.u32 4294901760, %v3913_v12  ;;  %v4507_v26 = vand.u32 4294901760, %v3915_v13  ;;  %v4512_v12 = vand.u32 4294901760, %v3927_v19 }
 0x1b8   : > { %3047 = vmatprep.subr.bf16.mxu1 %v3582_v0  ;;  %v4513_v13 = vand.u32 4294901760, %v3929_v20  ;;  %v1543_v19 = vand.u32 4294901760, %v1492_v17 }
 0x1ba   : > { %v4220_v33 = vsub.f32 %v1492_v17, %v1543_v19 }
 0x1bb   : > { %3049 = vmatpush3.bf16.msra.mxu1 %v3048_v27  ;;  %v3099_v27 = vpack.c.bf16 %v4511_v54, %v4510_v53  ;;  %v1636_v53 = vand.u32 4294901760, %v4065_v6  ;;  %v1643_v54 = vand.u32 4294901760, %v4067_v8 }
 0x1bc   : > { %3050 = vmatprep.subr.bf16.mxu1 %v3582_v0 }
 0x1bf   : > { %3052 = vmatpush3.bf16.msra.mxu1 %v3051_v34  ;;  %v3102_v34 = vpack.c.bf16 %v4513_v13, %v4512_v12  ;;  %v1637_v12 = vsub.f32 %v4065_v6, %v1636_v53  ;;  %v1644_v13 = vsub.f32 %v4067_v8, %v1643_v54 }
 0x1c0   : > { %3053 = vmatprep.subr.bf16.mxu1 %v3582_v0 }
 0x1c3   : > { %3055 = vmatpush3.bf16.msra.mxu1 %v3054_v35  ;;  %v1601_v35 = vand.u32 4294901760, %v4047_v42 }
 0x1c4   : > { %3056 = vmatprep.subr.bf16.mxu1 %v3582_v0 }
 0x1c5   : > { %v1602_v2 = vsub.f32 %v4047_v42, %v1601_v35 }
 0x1c6   : > { %2649 = vmatmul.mubr.f32.vlgmr.msra.gmra.mrb[2].mxu1 %v4021_v30  ;;  %v3096_v30 = vpack.c.bf16 %v4509_v39, %v4508_v36 }
 0x1c7   : > { %3058 = vmatpush3.bf16.msra.mxu1 %v3875_v43  ;;  %2683 = vmatprep.mubr.msk.f32.mxu1 %vm3583_vm0, %v3584_v1  ;;  %v1603_v51 = vand.u32 4294901760, %v1602_v2 }
 0x1c8   : > { %3059 = vmatprep.subr.bf16.mxu1 %v3582_v0 }
 0x1cb   : > { %3061 = vmatpush3.bf16.msra.mxu1 %v3880_v44 }
 0x1cc   : > { %3062 = vmatprep.subr.bf16.mxu1 %v3582_v0 }
 0x1cf   : > { %3064 = vmatpush3.bf16.msra.mxu1 %v3886_v45 }
 0x1d0   : > { %3065 = vmatprep.subr.bf16.mxu1 %v3582_v0 }
 0x1d3   : > { %3067 = vmatpush3.bf16.msra.mxu1 %v3891_v50 }
 0x1d4   : > { %3068 = vmatprep.subr.bf16.mxu1 %v3582_v0 }
 0x1d7   : > { %3070 = vmatpush3.bf16.msra.mxu1 %v3899_v57 }
 0x1d8   : > { %3071 = vmatprep.subr.bf16.mxu1 %v3582_v0 }
 0x1db   : > { %3073 = vmatpush3.bf16.msra.mxu1 %v3903_v62 }
 0x1dc   : > { %3074 = vmatprep.subr.bf16.mxu1 %v3582_v0 }
 0x1df   : > { %3076 = vmatpush3.bf16.msra.mxu1 %v3907_v5 }
 0x1e0   : > { %3077 = vmatprep.subr.bf16.mxu1 %v3582_v0 }
 0x1e3   : > { %3079 = vmatpush3.bf16.msra.mxu1 %v3925_v18 }
 0x1e4   : > { %3080 = vmatprep.subr.bf16.mxu1 %v3582_v0 }
 0x1e6   : > { %2684 = vmatmul.mubr.f32.vlgmr.msra.gmra.mrb[2].mxu1 %v919_v7  ;;  %v3093_v7 = vpack.c.bf16 %v4507_v26, %v4506_v25  ;;  %v1623_v26 = vsub.f32 %v4055_v38, %v1622_v11 }
 0x1e7   : > { %3082 = vmatpush3.bf16.msra.mxu1 %v3081_v23  ;;  %2718 = vmatprep.mubr.msk.f32.mxu1 %vm3583_vm0, %v3584_v1  ;;  %v1608_v23 = vand.u32 4294901760, %v4049_v60 }
 0x1e8   : > { %3083 = vmatprep.subr.bf16.mxu1 %v3582_v0  ;;  %v1624_v39 = vand.u32 4294901760, %v1623_v26 }
 0x1e9   : > { %v1609_v22 = vsub.f32 %v4049_v60, %v1608_v23 }
 0x1eb   : > { %3085 = vmatpush3.bf16.msra.mxu1 %v3084_v24  ;;  %v1615_v24 = vand.u32 4294901760, %v4053_v48 }
 0x1ec   : > { %3086 = vmatprep.subr.bf16.mxu1 %v3582_v0 }
 0x1ef   : > { %3088 = vmatpush3.bf16.msra.mxu1 %v3087_v10  ;;  %v1616_v10 = vsub.f32 %v4053_v48, %v1615_v24 }
 0x1f0   : > { %3089 = vmatprep.subr.bf16.mxu1 %v3582_v0 }
 0x1f1   : > { %v1617_v25 = vand.u32 4294901760, %v1616_v10 }
 0x1f3   : > { %3091 = vmatpush3.bf16.msra.mxu1 %v3090_v29  ;;  %v1610_v29 = vand.u32 4294901760, %v1609_v22  ;;  %v4485_v22 = vand.u32 4294901760, %v4217_v58 }
 0x1f4   : > { %3092 = vmatprep.subr.bf16.mxu1 %v3582_v0 }
 0x1f5   : > { %v3156_v36 = vpack.c.bf16 %v1617_v25, %v1610_v29  ;;  %v1686_v25 = vsub.f32 %v4217_v58, %v4485_v22 }
 0x1f7   : > { %3094 = vmatpush3.bf16.msra.mxu1 %v3093_v7  ;;  %v1630_v7 = vsub.f32 %v4061_v37, %v1629_v28 }
 0x1f8   : > { %3095 = vmatprep.subr.bf16.mxu1 %v3582_v0 }
 0x1fb   : > { %3097 = vmatpush3.bf16.msra.mxu1 %v3096_v30  ;;  %v1631_v30 = vand.u32 4294901760, %v1630_v7  ;;  %v1687_v7 = vand.u32 4294901760, %v1686_v25 }
 0x1fc   : > { %3098 = vmatprep.subr.bf16.mxu1 %v3582_v0 }
 0x1ff   : > { %3100 = vmatpush3.bf16.msra.mxu1 %v3099_v27  ;;  %v3159_v27 = vpack.c.bf16 %v1631_v30, %v1624_v39  ;;  %v4484_v39 = vand.u32 4294901760, %v4220_v33 }
 0x200   : > { %3101 = vmatprep.subr.bf16.mxu1 %v3582_v0 }
 0x203   : > { %3103 = vmatpush3.bf16.msra.mxu1 %v3102_v34  ;;  %v1638_v34 = vand.u32 4294901760, %v1637_v12 }
 0x204   : > { %3104 = vmatprep.subr.bf16.mxu1 %v3582_v0 }
 0x206   : > { %2719 = vmatmul.mubr.f32.vlgmr.msra.gmra.mrb[2].mxu1 %v4018_v31 }
 0x207   : > { %3106 = vmatpush3.bf16.msra.mxu1 %v3875_v43  ;;  %2753 = vmatprep.mubr.msk.f32.mxu1 %vm3583_vm0, %v3584_v1  ;;  %v1488_v43 = vld [vmem:[#allocation8 + $0x50] sm:$0xff] }
 0x208   : > { %3107 = vmatprep.subr.bf16.mxu1 %v3582_v0 }
 0x20b   : > { %3109 = vmatpush3.bf16.msra.mxu1 %v3880_v44  ;;  %v1489_v44 = vld [vmem:[#allocation8 + $0x58] sm:$0xff] }
 0x20c   : > { %3110 = vmatprep.subr.bf16.mxu1 %v3582_v0 }
 0x20f   : > { %3112 = vmatpush3.bf16.msra.mxu1 %v3886_v45  ;;  %v1531_v45 = vand.u32 4294901760, %v1488_v43 }
 0x210   : > { %3113 = vmatprep.subr.bf16.mxu1 %v3582_v0 }
 0x211   : > { %v4211_v41 = vsub.f32 %v1488_v43, %v1531_v45  ;;  %v1645_v43 = vand.u32 4294901760, %v1644_v13  ;;  %v1693_v13 = vsub.f32 %v4220_v33, %v4484_v39 }
 0x213   : > { %3115 = vmatpush3.bf16.msra.mxu1 %v3891_v50  ;;  %v1534_v50 = vand.u32 4294901760, %v1489_v44  ;;  %v1664_v17 = vand.u32 4294901760, %v4211_v41 }
 0x214   : > { %3116 = vmatprep.subr.bf16.mxu1 %v3582_v0 }
 0x215   : > { %v4193_v14 = vpack.c.bf16 %v1534_v50, %v1531_v45  ;;  %v4213_v55 = vsub.f32 %v1489_v44, %v1534_v50  ;;  %v1650_v44 = vand.u32 4294901760, %v4069_v32  ;;  %v1657_v45 = vand.u32 4294901760, %v4071_v46 }
 0x216   : > { %v3162_v50 = vpack.c.bf16 %v1645_v43, %v1638_v34  ;;  %v1694_v43 = vand.u32 4294901760, %v1693_v13 }
 0x217   : > { %3118 = vmatpush3.bf16.msra.mxu1 %v3899_v57  ;;  %v1490_v57 = vld [vmem:[#allocation8 + $0x60] sm:$0xff]  ;;  %3145 = vmatpush3.bf16.msra.mxu0 %v4193_v14  ;;  %v1658_v15 = vsub.f32 %v4071_v46, %v1657_v45 }
 0x218   : > { %3119 = vmatprep.subr.bf16.mxu1 %v3582_v0  ;;  %3146 = vmatprep.subr.bf16.mxu0 %v3582_v0 }
 0x21b   : > { %3121 = vmatpush3.bf16.msra.mxu1 %v3903_v62  ;;  %v1537_v62 = vand.u32 4294901760, %v1490_v57 }
 0x21c   : > { %3122 = vmatprep.subr.bf16.mxu1 %v3582_v0 }
 0x21d   : > { %v4215_v56 = vsub.f32 %v1490_v57, %v1537_v62  ;;  %v1651_v57 = vsub.f32 %v4069_v32, %v1650_v44 }
 0x21f   : > { %3124 = vmatpush3.bf16.msra.mxu1 %v3907_v5  ;;  %v4197_v5 = vpack.c.bf16 %v1540_v16, %v1537_v62  ;;  %v1652_v62 = vand.u32 4294901760, %v1651_v57  ;;  %v1659_v16 = vand.u32 4294901760, %v1658_v15 }
 0x220   : > { %3125 = vmatprep.subr.bf16.mxu1 %v3582_v0 }
 0x221   : > { %3148 = vmatpush3.bf16.msra.mxu0 %v4197_v5 }
 0x222   : > { %3149 = vmatprep.subr.bf16.mxu0 %v3582_v0 }
 0x223   : > { %3127 = vmatpush3.bf16.msra.mxu1 %v3925_v18  ;;  %v1493_v18 = vld [vmem:[#allocation8 + $0x78] sm:$0xff] }
 0x224   : > { %v1546_v20 = vand.u32 4294901760, %v1493_v18 }
 0x226   : > { %2754 = vmatmul.mubr.f32.vlgmr.msra.gmra.mrb[2].mxu1 %v4018_v31  ;;  %v1594_v31 = vand.u32 4294901760, %v4045_v3  ;;  %v4203_v47 = vpack.c.bf16 %v1546_v20, %v1543_v19  ;;  %v4222_v40 = vsub.f32 %v1493_v18, %v1546_v20  ;;  %v1671_v18 = vand.u32 4294901760, %v4213_v55 }
 0x227   : > { %v3165_v19 = vpack.c.bf16 %v1659_v16, %v1652_v62  ;;  %v1665_v20 = vsub.f32 %v4211_v41, %v1664_v17  ;;  %v3177_v62 = vpack.c.bf16 %v4047_v42, %v4045_v3  ;;  %v3180_v16 = vpack.c.bf16 %v4053_v48, %v4049_v60 }
 0x228   : > { %v1595_v52 = vsub.f32 %v4045_v3, %v1594_v31  ;;  %3151 = vmatpush3.bf16.msra.mxu0 %v4203_v47  ;;  %v4483_v30 = vand.u32 4294901760, %v4222_v40  ;;  %v3198_v25 = vpack.c.bf16 %v4222_v40, %v4220_v33  ;;  %v3231_v3 = vpack.c.bf16 %v1629_v28, %v1622_v11 }
 0x229   : > { %3152 = vmatprep.subr.bf16.mxu0 %v3582_v0  ;;  %v1666_v2 = vand.u32 4294901760, %v1665_v20  ;;  %v3183_v20 = vpack.c.bf16 %v4061_v37, %v4055_v38  ;;  %v3234_v48 = vpack.c.bf16 %v1643_v54, %v1636_v53  ;;  %v3237_v60 = vpack.c.bf16 %v1657_v45, %v1650_v44 }
 0x22a   : > { %v1596_v61 = vand.u32 4294901760, %v1595_v52  ;;  %v1672_v52 = vsub.f32 %v4213_v55, %v1671_v18  ;;  %v1700_v34 = vsub.f32 %v4222_v40, %v4483_v30  ;;  %v3240_v37 = vpack.c.bf16 %v1671_v18, %v1664_v17 }
 0x22b   : > { %v4514_v38 = vand.u32 4294901760, %v4215_v56  ;;  %v4515_v42 = vand.u32 4294901760, %v4217_v58 }
 0x22c   : > { %v4227_v21 = vpack.c.bf16 %v1603_v51, %v1596_v61  ;;  %v1673_v61 = vand.u32 4294901760, %v1672_v52  ;;  %v4486_v51 = vand.u32 4294901760, %v4215_v56  ;;  %v1701_v57 = vand.u32 4294901760, %v1700_v34 }
 0x22d   : > { %v3186_v52 = vpack.c.bf16 %v4067_v8, %v4065_v6  ;;  %v3243_v6 = vpack.c.bf16 %v4515_v42, %v4514_v38  ;;  %v4516_v8 = vand.u32 4294901760, %v4220_v33 }
 0x22e   : > { %v3168_v10 = vpack.c.bf16 %v1673_v61, %v1666_v2  ;;  %v1679_v29 = vsub.f32 %v4215_v56, %v4486_v51  ;;  %v3174_v15 = vpack.c.bf16 %v1701_v57, %v1694_v43  ;;  %v3189_v2 = vpack.c.bf16 %v4071_v46, %v4069_v32 }
 0x22f   : > { %v3192_v61 = vpack.c.bf16 %v4213_v55, %v4211_v41  ;;  %v4517_v32 = vand.u32 4294901760, %v4222_v40 }
 0x230   : > { %v1680_v26 = vand.u32 4294901760, %v1679_v29  ;;  %v3195_v29 = vpack.c.bf16 %v4217_v58, %v4215_v56 }
 0x231   : > { %v3246_v46 = vpack.c.bf16 %v4517_v32, %v4516_v8 }
 0x232   : > { %v3171_v12 = vpack.c.bf16 %v1687_v7, %v1680_v26  ;;  %v2276_v26 = vld [vmem:[%s4463_s4] ss:$0 sm:$0xff] }
 0x2f9   : > { %v1473_v7 = vpop.f32.mrb[2].mxu1 }
 0x2fa   : > { %v3274_v13 = vadd.f32 %v2276_v26, %v1473_v7  ;;  %v2755_v34 = vpop.f32.mrb[3].mxu1 }
 0x2fc   : > { %v1477_v43 = vmax.f32 %v3274_v13, 0.0 }
 0x2fe   : > { %v4302_v57 = vand.u32 4294901760, %v1477_v43 }
 0x300   : > { %v1582_v30 = vsub.f32 %v1477_v43, %v4302_v57 }
 0x302   : > { %v1583_v39 = vand.u32 4294901760, %v1582_v30 }
 0x304   : > { %v1584_v22 = vsub.f32 %v1582_v30, %v1583_v39 }
 0x306   : > { %v1585_v51 = vand.u32 4294901760, %v1584_v22 }
 0x308   : > { %2789 = vmatmul.mubr.f32.vlgmr.msra.gmra.mrb[2].mxu0 %v1585_v51 }
 0x309   : > { %3154 = vmatpush3.bf16.msra.mxu0 %v4227_v21  ;;  %2823 = vmatprep.mubr.msk.f32.mxu0 %vm3583_vm0, %v3584_v1  ;;  %v3225_v21 = vpack.c.bf16 %v1601_v35, %v1594_v31 }
 0x30a   : > { %3155 = vmatprep.subr.bf16.mxu0 %v3582_v0 }
 0x30d   : > { %3157 = vmatpush3.bf16.msra.mxu0 %v3156_v36  ;;  %v3228_v36 = vpack.c.bf16 %v1615_v24, %v1608_v23 }
 0x30e   : > { %3158 = vmatprep.subr.bf16.mxu0 %v3582_v0 }
 0x311   : > { %3160 = vmatpush3.bf16.msra.mxu0 %v3159_v27 }
 0x312   : > { %3161 = vmatprep.subr.bf16.mxu0 %v3582_v0 }
 0x315   : > { %3163 = vmatpush3.bf16.msra.mxu0 %v3162_v50 }
 0x316   : > { %3164 = vmatprep.subr.bf16.mxu0 %v3582_v0 }
 0x319   : > { %3166 = vmatpush3.bf16.msra.mxu0 %v3165_v19 }
 0x31a   : > { %3167 = vmatprep.subr.bf16.mxu0 %v3582_v0 }
 0x31d   : > { %3169 = vmatpush3.bf16.msra.mxu0 %v3168_v10 }
 0x31e   : > { %3170 = vmatprep.subr.bf16.mxu0 %v3582_v0 }
 0x321   : > { %3172 = vmatpush3.bf16.msra.mxu0 %v3171_v12 }
 0x322   : > { %3173 = vmatprep.subr.bf16.mxu0 %v3582_v0 }
 0x325   : > { %3175 = vmatpush3.bf16.msra.mxu0 %v3174_v15 }
 0x326   : > { %3176 = vmatprep.subr.bf16.mxu0 %v3582_v0 }
 0x328   : > { %2824 = vmatmul.mubr.f32.vlgmr.msra.gmra.mrb[2].mxu0 %v4302_v57 }
 0x329   : > { %3178 = vmatpush3.bf16.msra.mxu0 %v3177_v62  ;;  %2858 = vmatprep.mubr.msk.f32.mxu0 %vm3583_vm0, %v3584_v1 }
 0x32a   : > { %3179 = vmatprep.subr.bf16.mxu0 %v3582_v0 }
 0x32d   : > { %3181 = vmatpush3.bf16.msra.mxu0 %v3180_v16 }
 0x32e   : > { %3182 = vmatprep.subr.bf16.mxu0 %v3582_v0 }
 0x331   : > { %3184 = vmatpush3.bf16.msra.mxu0 %v3183_v20 }
 0x332   : > { %3185 = vmatprep.subr.bf16.mxu0 %v3582_v0 }
 0x335   : > { %3187 = vmatpush3.bf16.msra.mxu0 %v3186_v52 }
 0x336   : > { %3188 = vmatprep.subr.bf16.mxu0 %v3582_v0 }
 0x339   : > { %3190 = vmatpush3.bf16.msra.mxu0 %v3189_v2 }
 0x33a   : > { %3191 = vmatprep.subr.bf16.mxu0 %v3582_v0 }
 0x33d   : > { %3193 = vmatpush3.bf16.msra.mxu0 %v3192_v61 }
 0x33e   : > { %3194 = vmatprep.subr.bf16.mxu0 %v3582_v0 }
 0x341   : > { %3196 = vmatpush3.bf16.msra.mxu0 %v3195_v29 }
 0x342   : > { %3197 = vmatprep.subr.bf16.mxu0 %v3582_v0 }
 0x345   : > { %3199 = vmatpush3.bf16.msra.mxu0 %v3198_v25 }
 0x346   : > { %3200 = vmatprep.subr.bf16.mxu0 %v3582_v0 }
 0x348   : > { %2859 = vmatmul.mubr.f32.vlgmr.msra.gmra.mrb[2].mxu0 %v1582_v30 }
 0x349   : > { %3202 = vmatpush3.bf16.msra.mxu0 %v4043_v63  ;;  %2893 = vmatprep.mubr.msk.f32.mxu0 %vm3583_vm0, %v3584_v1 }
 0x34a   : > { %3203 = vmatprep.subr.bf16.mxu0 %v3582_v0 }
 0x34d   : > { %3205 = vmatpush3.bf16.msra.mxu0 %v4051_v49 }
 0x34e   : > { %3206 = vmatprep.subr.bf16.mxu0 %v3582_v0 }
 0x351   : > { %3208 = vmatpush3.bf16.msra.mxu0 %v4077_v4 }
 0x352   : > { %3209 = vmatprep.subr.bf16.mxu0 %v3582_v0 }
 0x355   : > { %3211 = vmatpush3.bf16.msra.mxu0 %v4085_v59 }
 0x356   : > { %3212 = vmatprep.subr.bf16.mxu0 %v3582_v0 }
 0x359   : > { %3214 = vmatpush3.bf16.msra.mxu0 %v4093_v9 }
 0x35a   : > { %3215 = vmatprep.subr.bf16.mxu0 %v3582_v0 }
 0x35d   : > { %3217 = vmatpush3.bf16.msra.mxu0 %v4193_v14 }
 0x35e   : > { %3218 = vmatprep.subr.bf16.mxu0 %v3582_v0 }
 0x361   : > { %3220 = vmatpush3.bf16.msra.mxu0 %v4197_v5 }
 0x362   : > { %3221 = vmatprep.subr.bf16.mxu0 %v3582_v0 }
 0x365   : > { %3223 = vmatpush3.bf16.msra.mxu0 %v4203_v47 }
 0x366   : > { %3224 = vmatprep.subr.bf16.mxu0 %v3582_v0 }
 0x368   : > { %2894 = vmatmul.mubr.f32.vlgmr.msra.gmra.mrb[2].mxu0 %v1583_v39 }
 0x369   : > { %3226 = vmatpush3.bf16.msra.mxu0 %v3225_v21  ;;  %2928 = vmatprep.mubr.msk.f32.mxu0 %vm3583_vm0, %v3584_v1 }
 0x36a   : > { %3227 = vmatprep.subr.bf16.mxu0 %v3582_v0 }
 0x36d   : > { %3229 = vmatpush3.bf16.msra.mxu0 %v3228_v36 }
 0x36e   : > { %3230 = vmatprep.subr.bf16.mxu0 %v3582_v0 }
 0x371   : > { %3232 = vmatpush3.bf16.msra.mxu0 %v3231_v3 }
 0x372   : > { %3233 = vmatprep.subr.bf16.mxu0 %v3582_v0 }
 0x375   : > { %3235 = vmatpush3.bf16.msra.mxu0 %v3234_v48 }
 0x376   : > { %3236 = vmatprep.subr.bf16.mxu0 %v3582_v0 }
 0x379   : > { %3238 = vmatpush3.bf16.msra.mxu0 %v3237_v60 }
 0x37a   : > { %3239 = vmatprep.subr.bf16.mxu0 %v3582_v0 }
 0x37d   : > { %3241 = vmatpush3.bf16.msra.mxu0 %v3240_v37 }
 0x37e   : > { %3242 = vmatprep.subr.bf16.mxu0 %v3582_v0 }
 0x381   : > { %3244 = vmatpush3.bf16.msra.mxu0 %v3243_v6 }
 0x382   : > { %3245 = vmatprep.subr.bf16.mxu0 %v3582_v0 }
 0x385   : > { %3247 = vmatpush3.bf16.msra.mxu0 %v3246_v46 }
 0x386   : > { %3248 = vmatprep.subr.bf16.mxu0 %v3582_v0 }
 0x388   : > { %2929 = vmatmul.mubr.f32.vlgmr.msra.gmra.mrb[2].mxu0 %v4302_v57 }
 0x389   : > { %3250 = vmatpush3.bf16.msra.mxu0 %v4043_v63  ;;  %2963 = vmatprep.mubr.msk.f32.mxu0 %vm3583_vm0, %v3584_v1  ;;  %v2141_v1 = vlaneseq }
 0x38a   : > { %3251 = vmatprep.subr.bf16.mxu0 %v3582_v0 }
 0x38d   : > { %3253 = vmatpush3.bf16.msra.mxu0 %v4051_v49  ;;  %v2277_v49 = vld [vmem:[%s4465_s6] ss:$0 sm:$0xff] }
 0x38e   : > { %3254 = vmatprep.subr.bf16.mxu0 %v3582_v0 }
 0x391   : > { %3256 = vmatpush3.bf16.msra.mxu0 %v4077_v4  ;;  %v2142_v4 = vand.u32 127, %v2141_v1 }
 0x392   : > { %3257 = vmatprep.subr.bf16.mxu0 %v3582_v0 }
 0x393   : > { %vm2145_vm2 = vcmp.lt.s32.totalorder %v2142_v4, 8 }
 0x395   : > { %3259 = vmatpush3.bf16.msra.mxu0 %v4085_v59 }
 0x396   : > { %3260 = vmatprep.subr.bf16.mxu0 %v3582_v0 }
 0x399   : > { %3262 = vmatpush3.bf16.msra.mxu0 %v4093_v9 }
 0x39a   : > { %3263 = vmatprep.subr.bf16.mxu0 %v3582_v0 }
 0x39d   : > { %3265 = vmatpush3.bf16.msra.mxu0 %v4193_v14 }
 0x39e   : > { %3266 = vmatprep.subr.bf16.mxu0 %v3582_v0 }
 0x3a1   : > { %3268 = vmatpush3.bf16.msra.mxu0 %v4197_v5 }
 0x3a2   : > { %3269 = vmatprep.subr.bf16.mxu0 %v3582_v0 }
 0x3a5   : > { %3271 = vmatpush3.bf16.msra.mxu0 %v4203_v47 }
 0x3a8   : > { %2964 = vmatmul.mubr.f32.vlgmr.msra.gmra.mrb[2].mxu0 %v4302_v57 }
 0x47b   : > { %v2137_v63 = vpop.f32.mrb[2].mxu0 }
 0x47c   : > { %v3275_v59 = vadd.f32 %v2277_v49, %v2137_v63  ;;  %v2965_v9 = vpop.f32.mrb[3].mxu0 }
 0x47e   : > { %v2143_v14 = vmax.f32 %v3275_v59, -20.0 }
 0x480   : > { %v2144_v0 = vmin.f32 %v2143_v14, 2.0 }
 0x482   : > { %v2146_v5 = vsel %vm2145_vm2, %v3275_v59, %v2144_v0 }
 0x483   : > { %2147 = vst [vmem:[%s337_s20] sm:$0xff] %v2146_v5 }
 0x484   : > { %3513 = shalt.err (!%p3510_p4)
}
 0x485   : > { %s3514_s8 = scalar_lea.hbm %s4415_s21, 128  ;;  %s3518_s11 = scalar_lea.hbm %s4466_s7, 256 }
 0x486   : > { %p3515_p0 = scmp.ne.s32.totalorder %s4415_s21, %s3514_s8  ;;  %p3519_p8 = scmp.lt.u32.totalorder %s4415_s21, %s4466_s7 }
 0x487   : > { %p3520_p13 = scmp.lt.u32.totalorder %s3518_s11, %s3514_s8  ;;  %p3522_p10 = scmp.lt.u32.totalorder %s3514_s8, %s4415_s21 }
 0x488   : > { %p3516_p9 = pnand %p3515_p0, %p3780_p5 }
 0x489   : > { %p3521_p6 = por %p3520_p13, %p3519_p8 }
 0x48a   : > { %p3517_p11 = pneg %p3516_p9 }
 0x48b   : > { %p3523_p3 = por %p3522_p10, %p3521_p6 }
 0x48d   : > { %p3524_p7 = pnand %p3523_p3, %p3517_p11 }
 0x48f   : > { %3527 = shalt.err (!%p3524_p7)
}
 0x490   : > { %3318 = dma.vmem_to_hbm [thread:$0]  (%p3780_p5), %s4417_s15, 128, %s4415_s21, %s2149_s16  }
 0x491 PF: > { %s4518_s20 = sld [smem:[#allocation15_spill]]  ;;  %s2174_s29 = sand.u32 1, %s3562_s24  }
 0x492   : > { %p4520_p1 = scmp.ge.s32.totalorder %s3574_s27, 2  ;;  %s2175_s12 = scalar_lea.sflag [#allocation4], %s2174_s29 }
 0x497   : > { %p4519_p12 = scmp.ne.s32.totalorder %s4518_s20, 0 }
 0x499   : > { %p3335_p2 = pnand %p4520_p1, %p4519_p12 }
 0x49b   : > { %3557 = dma.done.wait (!%p3335_p2), %s2175_s12, 128  }
 0x49c   : > { %3559 = vsyncadd (!%p3335_p2), %s2175_s12, 4294967168  ;;  %p22_p4 = scmp.ge.s32.totalorder %s3766_s22, 4   ;;  %s4521_s24 = smov %s3566_s25 }
 0x49d   : > { %s4522_s25 = smov %s3570_s26  ;;  %s4523_s26 = smov %s3776_s18 }
 0x49e   : > { %s4524_s27 = smov %s3766_s22  ;;  %24 = sbr.rel (!%p22_p4) target bundleno = 7 (0x7), region = 105 }
 0x4a5   :  { %2180 = vsyncpa [#allocation3], 1 }
 0x4a6   :  { %2182 = vsyncpa [#allocation3 + $0x1], 1 }
 0x4a7   :  { %2183 = vsyncpa [#allocation6], 1 }
 0x4a8   :  { %2184 = vsyncpa [#allocation9], 1 }
 0x4a9   :  { %2185 = vsyncpa [#allocation4], 1 }
 0x4aa   :  { %2187 = vsyncpa [#allocation4 + $0x1], 1 }

</bundles_post_ra>
